<compile_context>
chip_gen: v7x
topology: tpu7x:2x2x1
jax: 0.10.0
libtpu: 0.0.40
codegen_flags: <defaults>
</compile_context>

<pallas_src>
import numpy as np
import jax
import jax.numpy as jnp
from jax.experimental import pallas as pl
from jax.experimental.pallas import tpu as pltpu

K_STEPS = 16          # n_neurons in mtn() / relu_K
_LANES = 512          # lane-dense slab width (multiple of 128)
_MAX_ROWS = 512       # max rows per block -> 512*512*4B = 1 MiB per buffer


def _round_up(x, m):
    return ((x + m - 1) // m) * m


# ----------------------------------------------------------------------------
# Shared elementwise math (used both inside Pallas kernels and in the reference)
# ----------------------------------------------------------------------------
def _binq16(a, vmax):
    """Greedy 16-step binary spike decomposition, summed over spike steps.

    Equivalent to fs_coding(a, h=d=T=vmax*2^-(t+1), K=16, mt=1) followed by .sum(0).
    The torch code fires when (v - T)/(|v| + 1) > 0, which is exactly v > T since
    the denominator is strictly positive (divide eliminated per perf feedback).
    Invariant: fired-sum == a - v, so we never materialize the 0/1 spikes.
    """
    v = a
    for t in range(K_STEPS):
        thr = vmax * (2.0 ** -(t + 1))
        v = jnp.where(v > thr, v - thr, v)
    return a - v


def _oatn_quant_math(x):
    """OATN(x, fast=False, hight_acc=False).sum(0)  (per-element)."""
    x = jnp.clip(x, -500.0, 500.0)
    a = jnp.abs(x)
    vmax = jnp.where(a < 10.0, 10.0, 500.0)
    q = _binq16(a, vmax)
    return jnp.where(x < 0.0, -q, q)      # cheaper than jnp.sign(x) * q


def _oatn_ha_quant_math(x):
    """OATN(x, fast=False, hight_acc=True, hight_acc_fast=False).sum(0)."""
    x = jnp.clip(x, -200.0, 700.0)
    a = jnp.abs(x)
    vmax = jnp.where(x >= 0.0, 700.0, 200.0)
    q = _binq16(a, vmax)
    return jnp.where(x < 0.0, -q, q)


def _oatn2_quant_math(x):
    """OATN2(x, fast=False, thres1=2, thres2=50).sum(0)."""
    x = jnp.clip(x, -50.0, 50.0)
    a = jnp.abs(x)
    vmax = jnp.where(a < 2.0, 2.0, 50.0)
    q = _binq16(a, vmax)
    return jnp.where(x < 0.0, -q, q)


# ----------------------------------------------------------------------------
# Kernel 1: elementwise OATN spike quantization (big lane-dense tiles)
# ----------------------------------------------------------------------------
def _oatn_quant_kernel(x_ref, o_ref):
    o_ref[...] = _oatn_quant_math(x_ref[...])


def oatn_quant(x):
    """OATN(x, fast=False).sum(0) for any-shaped input, via one elementwise kernel."""
    or_shape, or_dtype = x.shape, x.dtype
    flat = x.reshape(-1).astype(jnp.float32)
    n = flat.shape[0]

    rows = max(-(-n // _LANES), 8)
    rows = _round_up(rows, 8)
    row_tile = min(_MAX_ROWS, rows)          # <= 1 MiB/buffer -> safe on v7x VMEM too
    rows_p = _round_up(rows, row_tile)
    n_pad = rows_p * _LANES
    if n_pad != n:
        flat = jnp.pad(flat, (0, n_pad - n))
    slab = flat.reshape(rows_p, _LANES)

    out = pl.pallas_call(
        _oatn_quant_kernel,
        out_shape=jax.ShapeDtypeStruct((rows_p, _LANES), jnp.float32),
        grid_spec=pltpu.PrefetchScalarGridSpec(
            num_scalar_prefetch=0,
            grid=(rows_p // row_tile,),
            in_specs=[pl.BlockSpec((row_tile, _LANES), lambda i: (i, 0))],
            out_specs=pl.BlockSpec((row_tile, _LANES), lambda i: (i, 0)),
        ),
        compiler_params=pltpu.CompilerParams(
            dimension_semantics=("parallel",)),
    )(slab)

    return out.reshape(-1)[:n].reshape(or_shape).astype(or_dtype)


# ----------------------------------------------------------------------------
# Kernel 2: dense (nn.Linear) -> q @ W^T + b     (dropout is identity at inference)
# ----------------------------------------------------------------------------
def _dense_bias_kernel(x_ref, w_ref, b_ref, o_ref):
    o_ref[...] = jnp.dot(x_ref[...], w_ref[...],
                         preferred_element_type=jnp.float32) + b_ref[...]


def dense_bias(x, w_t, b, *, max_row_tile=256):
    """x: (M, I) f32, w_t: (I, H) f32 (= torch weight transposed), b: (H,) f32."""
    M, I = x.shape
    H = w_t.shape[1]
    Mp = _round_up(max(M, 8), 8)
    row_tile = min(max_row_tile, Mp)
    Mp = _round_up(Mp, row_tile)
    if Mp != M:
        x = jnp.pad(x, ((0, Mp - M), (0, 0)))
    b2 = b.reshape(1, H)

    out = pl.pallas_call(
        _dense_bias_kernel,
        out_shape=jax.ShapeDtypeStruct((Mp, H), jnp.float32),
        grid_spec=pltpu.PrefetchScalarGridSpec(
            num_scalar_prefetch=0,
            grid=(Mp // row_tile,),
            in_specs=[pl.BlockSpec((row_tile, I), lambda i: (i, 0)),
                      pl.BlockSpec((I, H), lambda i: (0, 0)),
                      pl.BlockSpec((1, H), lambda i: (0, 0))],
            out_specs=pl.BlockSpec((row_tile, H), lambda i: (i, 0)),
        ),
        compiler_params=pltpu.CompilerParams(
            dimension_semantics=("parallel",)),
    )(x, w_t, b2)
    return out[:M]


# ----------------------------------------------------------------------------
# Kernel 3: residual add + spikeLN
# ----------------------------------------------------------------------------
def _spike_ln_kernel(x_ref, res_ref, g_ref, b_ref, o_ref):
    x = x_ref[...] + res_ref[...]                            # hidden + input_tensor
    c = x - jnp.mean(x, axis=-1, keepdims=True)              # == x @ W_rmvmean
    cq = _oatn_ha_quant_math(c)                              # OATN(hight_acc=True).sum(0)
    var = jnp.mean(cq * cq, axis=-1, keepdims=True)          # get_squre(...) @ W_var
    # TODO(synk): get_sqr / invert_tensor_precise / SNNMACOperater are undefined in the
    # provided source; exact rsqrt + multiply are used in their place (no eps, as in spikeLN).
    inv = jax.lax.rsqrt(var)
    p = cq * inv
    pq = _oatn2_quant_math(p)                                # OATN2(thres1=2, thres2=50).sum(0)
    o_ref[...] = pq * g_ref[...] + b_ref[...]


def spike_ln(x, res, gamma, beta, *, max_row_tile=256):
    """x, res: (M, H) f32; gamma, beta: (H,) f32."""
    M, H = x.shape
    Mp = _round_up(max(M, 8), 8)
    row_tile = min(max_row_tile, Mp)
    Mp = _round_up(Mp, row_tile)
    if Mp != M:
        x = jnp.pad(x, ((0, Mp - M), (0, 0)))
        res = jnp.pad(res, ((0, Mp - M), (0, 0)))
    g2 = gamma.reshape(1, H)
    b2 = beta.reshape(1, H)

    out = pl.pallas_call(
        _spike_ln_kernel,
        out_shape=jax.ShapeDtypeStruct((Mp, H), jnp.float32),
        grid_spec=pltpu.PrefetchScalarGridSpec(
            num_scalar_prefetch=0,
            grid=(Mp // row_tile,),
            in_specs=[pl.BlockSpec((row_tile, H), lambda i: (i, 0)),
                      pl.BlockSpec((row_tile, H), lambda i: (i, 0)),
                      pl.BlockSpec((1, H), lambda i: (0, 0)),
                      pl.BlockSpec((1, H), lambda i: (0, 0))],
            out_specs=pl.BlockSpec((row_tile, H), lambda i: (i, 0)),
        ),
        compiler_params=pltpu.CompilerParams(
            dimension_semantics=("parallel",)),
    )(x, res, g2, b2)
    return out[:M]


# ----------------------------------------------------------------------------
# Full BertOutput forward
# ----------------------------------------------------------------------------
@jax.jit
def bert_output_forward(hidden_states, input_tensor, w_t, bias, gamma, beta):
    B, S, I = hidden_states.shape
    H = w_t.shape[1]
    q = oatn_quant(hidden_states)                                   # OATN(fast=False).sum(0)
    d = dense_bias(q.reshape(B * S, I).astype(jnp.float32),
                   w_t.astype(jnp.float32), bias.astype(jnp.float32))
    # TODO(synk): nn.Dropout omitted (identity at inference).
    y = spike_ln(d,
                 input_tensor.reshape(B * S, H).astype(jnp.float32),
                 gamma.astype(jnp.float32), beta.astype(jnp.float32))
    # TODO(synk): the literal spikeLN carries a 16-step spike-train axis through the
    # undefined spiking helpers; it is collapsed (summed) here, returning (B, S, H).
    return y.reshape(B, S, H).astype(hidden_states.dtype)


# ----------------------------------------------------------------------------
# Pure-JAX reference (same math, XLA-lowered)
# ----------------------------------------------------------------------------
def _reference_bert_output(hidden_states, input_tensor, w_t, bias, gamma, beta):
    B, S, I = hidden_states.shape
    H = w_t.shape[1]
    hs = hidden_states.astype(jnp.float32)
    q = _oatn_quant_math(hs)
    d = jnp.dot(q.reshape(B * S, I), w_t.astype(jnp.float32),
                preferred_element_type=jnp.float32,
                precision=jax.lax.Precision.HIGHEST) + bias.astype(jnp.float32)
    x = d + input_tensor.reshape(B * S, H).astype(jnp.float32)
    c = x - jnp.mean(x, axis=-1, keepdims=True)
    cq = _oatn_ha_quant_math(c)
    var = jnp.mean(cq * cq, axis=-1, keepdims=True)
    inv = jax.lax.rsqrt(var)
    pq = _oatn2_quant_math(cq * inv)
    y = pq * gamma.astype(jnp.float32) + beta.astype(jnp.float32)
    return y.reshape(B, S, H)


if __name__ == "__main__":
    key = jax.random.PRNGKey(0)
    k_h, k_in, k_w, k_b, k_g, k_be = jax.random.split(key, 6)

    # Small BERT-ish shapes: batch=2, seq=8, intermediate=256, hidden=128.
    B, S, I, H = 2, 8, 256, 128
    hidden_states = jax.random.normal(k_h, (B, S, I), dtype=jnp.float32) * 6.0
    input_tensor = jax.random.normal(k_in, (B, S, H), dtype=jnp.float32)
    w_t = jax.random.normal(k_w, (I, H), dtype=jnp.float32) * 0.05   # dense.weight.T
    bias = jax.random.normal(k_b, (H,), dtype=jnp.float32) * 0.1
    gamma = 1.0 + 0.1 * jax.random.normal(k_g, (H,), dtype=jnp.float32)
    beta = 0.1 * jax.random.normal(k_be, (H,), dtype=jnp.float32)

    # 1) Strict check of the elementwise spike-quantization kernel (same inputs,
    #    same elementwise op sequence -> expected bit-exact vs XLA).
    q_kernel = jax.block_until_ready(oatn_quant(hidden_states))
    q_ref = _oatn_quant_math(hidden_states)
    np.testing.assert_allclose(np.asarray(q_kernel), np.asarray(q_ref),
                               rtol=0, atol=1e-6)

    # 2) End-to-end BertOutput forward.
    y = jax.block_until_ready(
        bert_output_forward(hidden_states, input_tensor, w_t, bias, gamma, beta))
    y_ref = _reference_bert_output(hidden_states, input_tensor, w_t, bias, gamma, beta)
    # Loose tolerance: the spike quantizers use strict '>' thresholds, so tiny
    # matmul/reduction rounding differences between the Mosaic and XLA lowerings can
    # push an element across a quantization boundary (one step <= 700 * 2^-16 ~ 1.1e-2).
    np.testing.assert_allclose(np.asarray(y), np.asarray(y_ref), rtol=0, atol=5e-2)

    assert y.shape == (B, S, H) and y.dtype == hidden_states.dtype
    print("KERNEL_OK")
</pallas_src>

<mosaic_0001>
module attributes {stable_mosaic.version = 11 : i64} {
  func.func @_oatn_quant_kernel(%arg0: i32, %arg1: memref<8x512xf32, #tpu.memory_space<vmem>>, %arg2: memref<8x512xf32, #tpu.memory_space<vmem>>) attributes {dimension_semantics = [#tpu.dimension_semantics<parallel>], iteration_bounds = array<i64: 1>, scalar_prefetch = 0 : i64, scratch_operands = 0 : i64, tpu.core_type = #tpu.core_type<tc>, window_params = [{transform_indices = @transform_0, window_bounds = array<i64: 8, 512>}, {transform_indices = @transform_1, window_bounds = array<i64: 8, 512>}]} {
    %c0 = arith.constant 0 : index
    %c0_0 = arith.constant 0 : index
    %0 = vector.load %arg1[%c0, %c0_0] : memref<8x512xf32, #tpu.memory_space<vmem>>, vector<8x512xf32>
    %cst = arith.constant -5.000000e+02 : f32
    %cst_1 = arith.constant 5.000000e+02 : f32
    %1 = vector.broadcast %cst : f32 to vector<8x512xf32>
    %2 = arith.maximumf %1, %0 : vector<8x512xf32>
    %3 = vector.broadcast %cst_1 : f32 to vector<8x512xf32>
    %4 = arith.minimumf %3, %2 : vector<8x512xf32>
    %5 = math.absf %4 : vector<8x512xf32>
    %cst_2 = arith.constant 1.000000e+01 : f32
    %6 = vector.broadcast %cst_2 : f32 to vector<8x512xf32>
    %7 = arith.cmpf olt, %5, %6 : vector<8x512xf32>
    %cst_3 = arith.constant 1.000000e+01 : f32
    %cst_4 = arith.constant 5.000000e+02 : f32
    %8 = vector.broadcast %cst_3 : f32 to vector<8x512xf32>
    %9 = vector.broadcast %cst_4 : f32 to vector<8x512xf32>
    %10 = arith.select %7, %8, %9 : vector<8x512xi1>, vector<8x512xf32>
    %cst_5 = arith.constant 5.000000e-01 : f32
    %11 = vector.broadcast %cst_5 : f32 to vector<8x512xf32>
    %12 = arith.mulf %10, %11 : vector<8x512xf32>
    %13 = arith.cmpf ogt, %5, %12 : vector<8x512xf32>
    %14 = arith.subf %5, %12 : vector<8x512xf32>
    %15 = arith.select %13, %14, %5 : vector<8x512xi1>, vector<8x512xf32>
    %cst_6 = arith.constant 2.500000e-01 : f32
    %16 = vector.broadcast %cst_6 : f32 to vector<8x512xf32>
    %17 = arith.mulf %10, %16 : vector<8x512xf32>
    %18 = arith.cmpf ogt, %15, %17 : vector<8x512xf32>
    %19 = arith.subf %15, %17 : vector<8x512xf32>
    %20 = arith.select %18, %19, %15 : vector<8x512xi1>, vector<8x512xf32>
    %cst_7 = arith.constant 1.250000e-01 : f32
    %21 = vector.broadcast %cst_7 : f32 to vector<8x512xf32>
    %22 = arith.mulf %10, %21 : vector<8x512xf32>
    %23 = arith.cmpf ogt, %20, %22 : vector<8x512xf32>
    %24 = arith.subf %20, %22 : vector<8x512xf32>
    %25 = arith.select %23, %24, %20 : vector<8x512xi1>, vector<8x512xf32>
    %cst_8 = arith.constant 6.250000e-02 : f32
    %26 = vector.broadcast %cst_8 : f32 to vector<8x512xf32>
    %27 = arith.mulf %10, %26 : vector<8x512xf32>
    %28 = arith.cmpf ogt, %25, %27 : vector<8x512xf32>
    %29 = arith.subf %25, %27 : vector<8x512xf32>
    %30 = arith.select %28, %29, %25 : vector<8x512xi1>, vector<8x512xf32>
    %cst_9 = arith.constant 3.125000e-02 : f32
    %31 = vector.broadcast %cst_9 : f32 to vector<8x512xf32>
    %32 = arith.mulf %10, %31 : vector<8x512xf32>
    %33 = arith.cmpf ogt, %30, %32 : vector<8x512xf32>
    %34 = arith.subf %30, %32 : vector<8x512xf32>
    %35 = arith.select %33, %34, %30 : vector<8x512xi1>, vector<8x512xf32>
    %cst_10 = arith.constant 1.562500e-02 : f32
    %36 = vector.broadcast %cst_10 : f32 to vector<8x512xf32>
    %37 = arith.mulf %10, %36 : vector<8x512xf32>
    %38 = arith.cmpf ogt, %35, %37 : vector<8x512xf32>
    %39 = arith.subf %35, %37 : vector<8x512xf32>
    %40 = arith.select %38, %39, %35 : vector<8x512xi1>, vector<8x512xf32>
    %cst_11 = arith.constant 7.812500e-03 : f32
    %41 = vector.broadcast %cst_11 : f32 to vector<8x512xf32>
    %42 = arith.mulf %10, %41 : vector<8x512xf32>
    %43 = arith.cmpf ogt, %40, %42 : vector<8x512xf32>
    %44 = arith.subf %40, %42 : vector<8x512xf32>
    %45 = arith.select %43, %44, %40 : vector<8x512xi1>, vector<8x512xf32>
    %cst_12 = arith.constant 3.906250e-03 : f32
    %46 = vector.broadcast %cst_12 : f32 to vector<8x512xf32>
    %47 = arith.mulf %10, %46 : vector<8x512xf32>
    %48 = arith.cmpf ogt, %45, %47 : vector<8x512xf32>
    %49 = arith.subf %45, %47 : vector<8x512xf32>
    %50 = arith.select %48, %49, %45 : vector<8x512xi1>, vector<8x512xf32>
    %cst_13 = arith.constant 0.001953125 : f32
    %51 = vector.broadcast %cst_13 : f32 to vector<8x512xf32>
    %52 = arith.mulf %10, %51 : vector<8x512xf32>
    %53 = arith.cmpf ogt, %50, %52 : vector<8x512xf32>
    %54 = arith.subf %50, %52 : vector<8x512xf32>
    %55 = arith.select %53, %54, %50 : vector<8x512xi1>, vector<8x512xf32>
    %cst_14 = arith.constant 9.765625E-4 : f32
    %56 = vector.broadcast %cst_14 : f32 to vector<8x512xf32>
    %57 = arith.mulf %10, %56 : vector<8x512xf32>
    %58 = arith.cmpf ogt, %55, %57 : vector<8x512xf32>
    %59 = arith.subf %55, %57 : vector<8x512xf32>
    %60 = arith.select %58, %59, %55 : vector<8x512xi1>, vector<8x512xf32>
    %cst_15 = arith.constant 4.8828125E-4 : f32
    %61 = vector.broadcast %cst_15 : f32 to vector<8x512xf32>
    %62 = arith.mulf %10, %61 : vector<8x512xf32>
    %63 = arith.cmpf ogt, %60, %62 : vector<8x512xf32>
    %64 = arith.subf %60, %62 : vector<8x512xf32>
    %65 = arith.select %63, %64, %60 : vector<8x512xi1>, vector<8x512xf32>
    %cst_16 = arith.constant 2.44140625E-4 : f32
    %66 = vector.broadcast %cst_16 : f32 to vector<8x512xf32>
    %67 = arith.mulf %10, %66 : vector<8x512xf32>
    %68 = arith.cmpf ogt, %65, %67 : vector<8x512xf32>
    %69 = arith.subf %65, %67 : vector<8x512xf32>
    %70 = arith.select %68, %69, %65 : vector<8x512xi1>, vector<8x512xf32>
    %cst_17 = arith.constant 1.22070313E-4 : f32
    %71 = vector.broadcast %cst_17 : f32 to vector<8x512xf32>
    %72 = arith.mulf %10, %71 : vector<8x512xf32>
    %73 = arith.cmpf ogt, %70, %72 : vector<8x512xf32>
    %74 = arith.subf %70, %72 : vector<8x512xf32>
    %75 = arith.select %73, %74, %70 : vector<8x512xi1>, vector<8x512xf32>
    %cst_18 = arith.constant 6.10351563E-5 : f32
    %76 = vector.broadcast %cst_18 : f32 to vector<8x512xf32>
    %77 = arith.mulf %10, %76 : vector<8x512xf32>
    %78 = arith.cmpf ogt, %75, %77 : vector<8x512xf32>
    %79 = arith.subf %75, %77 : vector<8x512xf32>
    %80 = arith.select %78, %79, %75 : vector<8x512xi1>, vector<8x512xf32>
    %cst_19 = arith.constant 3.05175781E-5 : f32
    %81 = vector.broadcast %cst_19 : f32 to vector<8x512xf32>
    %82 = arith.mulf %10, %81 : vector<8x512xf32>
    %83 = arith.cmpf ogt, %80, %82 : vector<8x512xf32>
    %84 = arith.subf %80, %82 : vector<8x512xf32>
    %85 = arith.select %83, %84, %80 : vector<8x512xi1>, vector<8x512xf32>
    %cst_20 = arith.constant 1.52587891E-5 : f32
    %86 = vector.broadcast %cst_20 : f32 to vector<8x512xf32>
    %87 = arith.mulf %10, %86 : vector<8x512xf32>
    %88 = arith.cmpf ogt, %85, %87 : vector<8x512xf32>
    %89 = arith.subf %85, %87 : vector<8x512xf32>
    %90 = arith.select %88, %89, %85 : vector<8x512xi1>, vector<8x512xf32>
    %91 = arith.subf %5, %90 : vector<8x512xf32>
    %cst_21 = arith.constant 0.000000e+00 : f32
    %92 = vector.broadcast %cst_21 : f32 to vector<8x512xf32>
    %93 = arith.cmpf olt, %4, %92 : vector<8x512xf32>
    %cst_22 = arith.constant 0.000000e+00 : f32
    %94 = vector.broadcast %cst_22 : f32 to vector<8x512xf32>
    %95 = arith.subf %94, %91 : vector<8x512xf32>
    %96 = arith.select %93, %95, %91 : vector<8x512xi1>, vector<8x512xf32>
    %c0_23 = arith.constant 0 : index
    %c0_24 = arith.constant 0 : index
    %97 = vector.load %arg2[%c0_23, %c0_24] : memref<8x512xf32, #tpu.memory_space<vmem>>, vector<8x512xf32>
    tpu.vector_store %arg2[%c0_23, %c0_24], %96 {strides = array<i32>} : memref<8x512xf32, #tpu.memory_space<vmem>>, vector<8x512xf32>,
    return
  }
  func.func @transform_0(%arg0: i32) -> (i32, i32) {
    %c0_i32 = arith.constant 0 : i32
    %c0_i32_0 = arith.constant 0 : i32
    return %arg0, %c0_i32 : i32, i32
  }
  func.func @transform_1(%arg0: i32) -> (i32, i32) {
    %c0_i32 = arith.constant 0 : i32
    %c0_i32_0 = arith.constant 0 : i32
    return %arg0, %c0_i32 : i32, i32
  }
}

</mosaic_0001>

<bundles_post_ra>
// kernel: tpu_custom_call.1
= control target key start
LH: loop header
LB: loop body
LE: loop exit
PB: predicated region body
PF: predicated region fallthrough
CT: control target
= control target key end

     0   :  { %6 = vsyncpa [#allocation3], 0  ;;  %s624_s0 = inlined_call_operand.hbm [shape: f32[8,512], index: 0, kind: input, shape index: {}]   ;;  %s625_s1 = inlined_call_operand.hbm [shape: f32[8,512], index: 1, kind: output, shape index: {}]  }
   0x1   :  { %7 = vsyncpa [#allocation4], 0  ;;  %s391_s6 = smov [#allocation2]   ;;  %s343_s10 = scalar_lea.hbm %s624_s0, 512 }
   0x2   :  { %s14_s7 = sshll.u32 %s391_s6, 4  ;;  %p344_p0 = scmp.ne.s32.totalorder %s624_s0, %s343_s10  ;;  %s15_s7 = int_to_ptr.vmem [resolvable:$true] %s14_s7 }
   0x3   :  { %p347_p1 = scmp.lt.u32.totalorder %s343_s10, %s624_s0 }
   0x5   :  { %p349_p2 = pnand %p347_p1, %p344_p0 }
   0x7   :  { %352 = shalt.err (!%p349_p2)
}
   0x8   :  { %s353_s15 = scalar_lea.vmem %s15_s7, 512  ;;  %p358_p4 = scmp.lt.s32.totalorder %s15_s7, %s15_s7 }
   0x9   :  { %p354_p3 = scmp.ne.s32.totalorder %s15_s7, %s353_s15  ;;  %p359_p5 = scmp.lt.s32.totalorder %s353_s15, %s353_s15 }
   0xb   :  { %p360_p6 = por %p359_p5, %p358_p4 }
   0xd   :  { %p361_p7 = pnand %p360_p6, %p354_p3 }
   0xf   :  { %364 = shalt.err (!%p361_p7)
}
  0x10   :  { %17 = dma.hbm_to_vmem [thread:$0]  %s624_s0, 512, %s15_s7, [#allocation3]  }
  0x11   :  { %387 = dma.done.wait [#allocation3], 512  }
  0x12   :  { %388 = vsyncadd [#allocation3], 4294966784  ;;  %v416_v0 = vld [vmem:[#allocation2] sm:$0xff]  ;;  %v418_v1 = vld [vmem:[#allocation2 + $0x8] sm:$0xff]  ;;  %v392_v9 = vmov 500.0   ;;  %s393_s0 = smov [#allocation5]  }
  0x13   :  { %v420_v2 = vld [vmem:[#allocation2 + $0x10] sm:$0xff]  ;;  %v336_v3 = vclamps-f32 %v416_v0, 500.0  ;;  %v337_v4 = vclamps-f32 %v418_v1, 500.0  ;;  %v433_v8 = vld [vmem:[#allocation2 + $0x18] sm:$0xff]  ;;  %s327_s18 = sshll.u32 %s393_s0, 4  ;;  %s328_s18 = int_to_ptr.vmem [resolvable:$true] %s327_s18 }
  0x14   :  { %v338_v5 = vclamps-f32 %v420_v2, 500.0  ;;  %v339_v12 = vclamps-f32 %v433_v8, 500.0  ;;  %s365_s19 = scalar_lea.vmem %s328_s18, 512  ;;  %p370_p9 = scmp.lt.s32.totalorder %s328_s18, %s328_s18 }
  0x15   :  { %v427_v6 = vand.u32 2147483647, %v336_v3  ;;  %v431_v7 = vand.u32 2147483647, %v337_v4  ;;  %p366_p8 = scmp.ne.s32.totalorder %s328_s18, %s365_s19  ;;  %p371_p10 = scmp.lt.s32.totalorder %s365_s19, %s365_s19 }
  0x16   :  { %v440_v11 = vand.u32 2147483647, %v338_v5  ;;  %v451_v18 = vand.u32 2147483647, %v339_v12 }
  0x17   :  { %vm37_vm0 = vcmp.lt.f32.partialorder %v427_v6, 10.0  ;;  %vm38_vm1 = vcmp.lt.f32.partialorder %v431_v7, 10.0  ;;  %p372_p11 = por %p371_p10, %p370_p9 }
  0x18   :  { %v41_v10 = vsel %vm37_vm0, 10.0, %v392_v9  ;;  %v444_v15 = vsel %vm38_vm1, 10.0, %v392_v9  ;;  %vm39_vm3 = vcmp.lt.f32.partialorder %v440_v11, 10.0  ;;  %vm40_vm14 = vcmp.lt.f32.partialorder %v451_v18, 10.0 }
  0x19   :  { %v45_v13 = vmul.f32 0.5, %v41_v10  ;;  %v61_v14 = vmul.f32 0.25, %v41_v10  ;;  %v77_v17 = vmul.f32 0.125, %v41_v10  ;;  %v93_v20 = vmul.f32 0.0625, %v41_v10  ;;  %p373_p12 = pnand %p372_p11, %p366_p8 }
  0x1a   :  { %v109_v21 = vmul.f32 0.03125, %v41_v10  ;;  %v46_v22 = vmul.f32 0.5, %v444_v15  ;;  %v125_v24 = vmul.f32 0.015625, %v41_v10  ;;  %v62_v25 = vmul.f32 0.25, %v444_v15 }
  0x1b   :  { %vm49_vm2 = vcmp.gt.f32.partialorder %v427_v6, %v45_v13  ;;  %v53_v16 = vsub.f32 %v427_v6, %v45_v13  ;;  %v456_v26 = vmul.f32 0.0078125, %v41_v10  ;;  %v458_v27 = vmul.f32 0.00390625, %v41_v10 }
  0x1c   :  { %vm50_vm5 = vcmp.gt.f32.partialorder %v431_v7, %v46_v22  ;;  %v54_v28 = vsub.f32 %v431_v7, %v46_v22  ;;  %v462_v30 = vmul.f32 0.001953125, %v41_v10  ;;  %v464_v31 = vmul.f32 0.0009765625, %v41_v10 }
  0x1d   :  { %v57_v19 = vsel %vm49_vm2, %v53_v16, %v427_v6  ;;  %v466_v32 = vmul.f32 0.00048828125, %v41_v10  ;;  %v78_v35 = vmul.f32 0.125, %v444_v15  ;;  %v470_v36 = vmul.f32 0.00024414063, %v41_v10 }
  0x1e   :  { %vm65_vm4 = vcmp.gt.f32.partialorder %v57_v19, %v61_v14  ;;  %v69_v23 = vsub.f32 %v57_v19, %v61_v14  ;;  %v58_v34 = vsel %vm50_vm5, %v54_v28, %v431_v7  ;;  %v472_v37 = vmul.f32 0.00012207031, %v41_v10 }
  0x1f   :  { %vm66_vm7 = vcmp.gt.f32.partialorder %v58_v34, %v62_v25  ;;  %v70_v38 = vsub.f32 %v58_v34, %v62_v25  ;;  %v474_v40 = vmul.f32 6.1035156e-05, %v41_v10  ;;  %v476_v41 = vmul.f32 3.0517578e-05, %v41_v10 }
  0x20   :  { %v73_v29 = vsel %vm65_vm4, %v69_v23, %v57_v19  ;;  %v478_v42 = vmul.f32 1.5258789e-05, %v41_v10  ;;  %v94_v45 = vmul.f32 0.0625, %v444_v15  ;;  %v110_v47 = vmul.f32 0.03125, %v444_v15 }
  0x21   :  { %vm81_vm6 = vcmp.gt.f32.partialorder %v73_v29, %v77_v17  ;;  %v85_v33 = vsub.f32 %v73_v29, %v77_v17  ;;  %v74_v44 = vsel %vm66_vm7, %v70_v38, %v58_v34  ;;  %v485_v48 = vsel %vm39_vm3, 10.0, %v392_v9 }
  0x22   :  { %vm82_vm9 = vcmp.gt.f32.partialorder %v74_v44, %v78_v35  ;;  %v86_v46 = vsub.f32 %v74_v44, %v78_v35  ;;  %v126_v50 = vmul.f32 0.015625, %v444_v15  ;;  %v142_v51 = vmul.f32 0.0078125, %v444_v15 }
  0x23   :  { %v89_v39 = vsel %vm81_vm6, %v85_v33, %v73_v29  ;;  %v47_v52 = vmul.f32 0.5, %v485_v48  ;;  %v63_v55 = vmul.f32 0.25, %v485_v48  ;;  %v158_v59 = vmul.f32 0.00390625, %v444_v15 }
  0x24   :  { %vm97_vm8 = vcmp.gt.f32.partialorder %v89_v39, %v93_v20  ;;  %v101_v43 = vsub.f32 %v89_v39, %v93_v20  ;;  %v90_v54 = vsel %vm82_vm9, %v86_v46, %v74_v44  ;;  %v495_v60 = vmul.f32 0.001953125, %v444_v15 }
  0x25   :  { %vm98_vm11 = vcmp.gt.f32.partialorder %v90_v54, %v94_v45  ;;  %v102_v56 = vsub.f32 %v90_v54, %v94_v45  ;;  %vm51_vm12 = vcmp.gt.f32.partialorder %v440_v11, %v47_v52  ;;  %v55_v57 = vsub.f32 %v440_v11, %v47_v52 }
  0x26   :  { %v105_v49 = vsel %vm97_vm8, %v101_v43, %v89_v39  ;;  %v79_v61 = vmul.f32 0.125, %v485_v48  ;;  %v501_v17 = vmul.f32 0.0009765625, %v444_v15  ;;  %v504_v19 = vmul.f32 0.00048828125, %v444_v15 }
  0x27   :  { %vm113_vm10 = vcmp.gt.f32.partialorder %v105_v49, %v109_v21  ;;  %v117_v53 = vsub.f32 %v105_v49, %v109_v21  ;;  %v106_v63 = vsel %vm98_vm11, %v102_v56, %v90_v54  ;;  %v59_v10 = vsel %vm51_vm12, %v55_v57, %v440_v11 }
  0x28   :  { %vm114_vm15 = vcmp.gt.f32.partialorder %v106_v63, %v110_v47  ;;  %v118_v13 = vsub.f32 %v106_v63, %v110_v47  ;;  %vm67_vm0 = vcmp.gt.f32.partialorder %v59_v10, %v63_v55  ;;  %v71_v14 = vsub.f32 %v59_v10, %v63_v55 }
  0x29   :  { %v121_v58 = vsel %vm113_vm10, %v117_v53, %v105_v49  ;;  %v95_v20 = vmul.f32 0.0625, %v485_v48  ;;  %v510_v29 = vmul.f32 0.00024414063, %v444_v15  ;;  %v513_v33 = vmul.f32 0.00012207031, %v444_v15 }
  0x2a   :  { %vm129_vm13 = vcmp.gt.f32.partialorder %v121_v58, %v125_v24  ;;  %v133_v62 = vsub.f32 %v121_v58, %v125_v24  ;;  %v122_v22 = vsel %vm114_vm15, %v118_v13, %v106_v63  ;;  %v75_v23 = vsel %vm67_vm0, %v71_v14, %v59_v10 }
  0x2b   :  { %vm130_vm2 = vcmp.gt.f32.partialorder %v122_v22, %v126_v50  ;;  %v134_v24 = vsub.f32 %v122_v22, %v126_v50  ;;  %vm83_vm3 = vcmp.gt.f32.partialorder %v75_v23, %v79_v61  ;;  %v87_v25 = vsub.f32 %v75_v23, %v79_v61 }
  0x2c   :  { %v137_v16 = vsel %vm129_vm13, %v133_v62, %v121_v58  ;;  %v111_v34 = vmul.f32 0.03125, %v485_v48  ;;  %v519_v45 = vmul.f32 6.1035156e-05, %v444_v15  ;;  %v522_v46 = vmul.f32 3.0517578e-05, %v444_v15 }
  0x2d   :  { %vm145_vm1 = vcmp.gt.f32.partialorder %v137_v16, %v456_v26  ;;  %v149_v21 = vsub.f32 %v137_v16, %v456_v26  ;;  %v138_v26 = vsel %vm130_vm2, %v134_v24, %v122_v22  ;;  %v91_v38 = vsel %vm83_vm3, %v87_v25, %v75_v23 }
  0x2e   :  { %vm146_vm5 = vcmp.gt.f32.partialorder %v138_v26, %v142_v51  ;;  %v150_v39 = vsub.f32 %v138_v26, %v142_v51  ;;  %vm99_vm6 = vcmp.gt.f32.partialorder %v91_v38, %v95_v20  ;;  %v103_v43 = vsub.f32 %v91_v38, %v95_v20 }
  0x2f   :  { %v153_v28 = vsel %vm145_vm1, %v149_v21, %v137_v16  ;;  %v127_v47 = vmul.f32 0.015625, %v485_v48  ;;  %v528_v54 = vmul.f32 1.5258789e-05, %v444_v15  ;;  %v143_v55 = vmul.f32 0.0078125, %v485_v48 }
  0x30   :  { %vm161_vm4 = vcmp.gt.f32.partialorder %v153_v28, %v458_v27  ;;  %v165_v35 = vsub.f32 %v153_v28, %v458_v27  ;;  %v154_v27 = vsel %vm146_vm5, %v150_v39, %v138_v26  ;;  %v107_v50 = vsel %vm99_vm6, %v103_v43, %v91_v38 }
  0x31   :  { %vm162_vm8 = vcmp.gt.f32.partialorder %v154_v27, %v158_v59  ;;  %v166_v52 = vsub.f32 %v154_v27, %v158_v59  ;;  %vm115_vm9 = vcmp.gt.f32.partialorder %v107_v50, %v111_v34  ;;  %v119_v51 = vsub.f32 %v107_v50, %v111_v34 }
  0x32   :  { %v169_v44 = vsel %vm161_vm4, %v165_v35, %v153_v28  ;;  %v534_v56 = vsel %vm40_vm14, 10.0, %v392_v9  ;;  %v159_v62 = vmul.f32 0.00390625, %v485_v48  ;;  %v175_v63 = vmul.f32 0.001953125, %v485_v48 }
  0x33   :  { %vm177_vm7 = vcmp.gt.f32.partialorder %v169_v44, %v462_v30  ;;  %v181_v49 = vsub.f32 %v169_v44, %v462_v30  ;;  %v170_v57 = vsel %vm162_vm8, %v166_v52, %v154_v27  ;;  %v123_v58 = vsel %vm115_vm9, %v119_v51, %v107_v50 }
  0x34   :  { %vm178_vm11 = vcmp.gt.f32.partialorder %v170_v57, %v495_v60  ;;  %v182_v59 = vsub.f32 %v170_v57, %v495_v60  ;;  %vm131_vm12 = vcmp.gt.f32.partialorder %v123_v58, %v127_v47  ;;  %v135_v15 = vsub.f32 %v123_v58, %v127_v47 }
  0x35   :  { %v185_v53 = vsel %vm177_vm7, %v181_v49, %v169_v44  ;;  %v48_v9 = vmul.f32 0.5, %v534_v56  ;;  %v64_v21 = vmul.f32 0.25, %v534_v56  ;;  %v191_v28 = vmul.f32 0.0009765625, %v485_v48 }
  0x36   :  { %vm193_vm10 = vcmp.gt.f32.partialorder %v185_v53, %v464_v31  ;;  %v197_v30 = vsub.f32 %v185_v53, %v464_v31  ;;  %v186_v31 = vsel %vm178_vm11, %v182_v59, %v170_v57  ;;  %v139_v13 = vsel %vm131_vm12, %v135_v15, %v123_v58 }
  0x37   :  { %vm194_vm14 = vcmp.gt.f32.partialorder %v186_v31, %v501_v17  ;;  %v198_v14 = vsub.f32 %v186_v31, %v501_v17  ;;  %vm147_vm15 = vcmp.gt.f32.partialorder %v139_v13, %v143_v55  ;;  %v151_v60 = vsub.f32 %v139_v13, %v143_v55 }
  0x38   :  { %v201_v61 = vsel %vm193_vm10, %v197_v30, %v185_v53  ;;  %vm52_vm0 = vcmp.gt.f32.partialorder %v451_v18, %v48_v9  ;;  %v56_v20 = vsub.f32 %v451_v18, %v48_v9  ;;  %v207_v34 = vmul.f32 0.00048828125, %v485_v48 }
  0x39   :  { %vm209_vm13 = vcmp.gt.f32.partialorder %v201_v61, %v466_v32  ;;  %v213_v10 = vsub.f32 %v201_v61, %v466_v32  ;;  %v202_v32 = vsel %vm194_vm14, %v198_v14, %v186_v31  ;;  %v155_v23 = vsel %vm147_vm15, %v151_v60, %v139_v13 }
  0x3a   :  { %vm210_vm2 = vcmp.gt.f32.partialorder %v202_v32, %v504_v19  ;;  %v214_v24 = vsub.f32 %v202_v32, %v504_v19  ;;  %vm163_vm3 = vcmp.gt.f32.partialorder %v155_v23, %v159_v62  ;;  %v167_v17 = vsub.f32 %v155_v23, %v159_v62 }
  0x3b   :  { %v217_v16 = vsel %vm209_vm13, %v213_v10, %v201_v61  ;;  %v60_v35 = vsel %vm52_vm0, %v56_v20, %v451_v18  ;;  %v80_v47 = vmul.f32 0.125, %v534_v56  ;;  %v223_v51 = vmul.f32 0.00024414063, %v485_v48 }
  0x3c   :  { %vm225_vm1 = vcmp.gt.f32.partialorder %v217_v16, %v470_v36  ;;  %v229_v22 = vsub.f32 %v217_v16, %v470_v36  ;;  %v218_v36 = vsel %vm210_vm2, %v214_v24, %v202_v32  ;;  %v171_v38 = vsel %vm163_vm3, %v167_v17, %v155_v23 }
  0x3d   :  { %vm226_vm5 = vcmp.gt.f32.partialorder %v218_v36, %v510_v29  ;;  %v230_v39 = vsub.f32 %v218_v36, %v510_v29  ;;  %vm179_vm6 = vcmp.gt.f32.partialorder %v171_v38, %v175_v63  ;;  %v183_v19 = vsub.f32 %v171_v38, %v175_v63 }
  0x3e   :  { %v233_v25 = vsel %vm225_vm1, %v229_v22, %v217_v16  ;;  %vm68_vm7 = vcmp.gt.f32.partialorder %v60_v35, %v64_v21  ;;  %v72_v44 = vsub.f32 %v60_v35, %v64_v21  ;;  %v239_v53 = vmul.f32 0.00012207031, %v485_v48 }
  0x3f   :  { %vm241_vm4 = vcmp.gt.f32.partialorder %v233_v25, %v472_v37  ;;  %v245_v26 = vsub.f32 %v233_v25, %v472_v37  ;;  %v234_v27 = vsel %vm226_vm5, %v230_v39, %v218_v36  ;;  %v187_v50 = vsel %vm179_vm6, %v183_v19, %v171_v38 }
  0x40   :  { %vm242_vm9 = vcmp.gt.f32.partialorder %v234_v27, %v513_v33  ;;  %v246_v37 = vsub.f32 %v234_v27, %v513_v33  ;;  %vm195_vm10 = vcmp.gt.f32.partialorder %v187_v50, %v191_v28  ;;  %v199_v52 = vsub.f32 %v187_v50, %v191_v28 }
  0x41   :  { %v249_v43 = vsel %vm241_vm4, %v245_v26, %v233_v25  ;;  %v76_v55 = vsel %vm68_vm7, %v72_v44, %v60_v35  ;;  %v96_v61 = vmul.f32 0.0625, %v534_v56  ;;  %vm579_vm2 = vcmp.lt.f32.partialorder %v336_v3, 0.0 }
  0x42   :  { %vm257_vm8 = vcmp.gt.f32.partialorder %v249_v43, %v474_v40  ;;  %v261_v49 = vsub.f32 %v249_v43, %v474_v40  ;;  %v250_v57 = vsel %vm242_vm9, %v246_v37, %v234_v27  ;;  %v203_v40 = vsel %vm195_vm10, %v199_v52, %v187_v50 }
  0x43   :  { %vm258_vm12 = vcmp.gt.f32.partialorder %v250_v57, %v519_v45  ;;  %v262_v58 = vsub.f32 %v250_v57, %v519_v45  ;;  %vm211_vm13 = vcmp.gt.f32.partialorder %v203_v40, %v207_v34  ;;  %v215_v33 = vsub.f32 %v203_v40, %v207_v34 }
  0x44   :  { %v265_v29 = vsel %vm257_vm8, %v261_v49, %v249_v43  ;;  %vm84_vm14 = vcmp.gt.f32.partialorder %v76_v55, %v80_v47  ;;  %v88_v15 = vsub.f32 %v76_v55, %v80_v47  ;;  %v255_v16 = vmul.f32 6.1035156e-05, %v485_v48 }
  0x45   :  { %vm273_vm11 = vcmp.gt.f32.partialorder %v265_v29, %v476_v41  ;;  %v277_v30 = vsub.f32 %v265_v29, %v476_v41  ;;  %v266_v63 = vsel %vm258_vm12, %v262_v58, %v250_v57  ;;  %v219_v9 = vsel %vm211_vm13, %v215_v33, %v203_v40 }
  0x46   :  { %vm274_vm0 = vcmp.gt.f32.partialorder %v266_v63, %v522_v46  ;;  %v278_v41 = vsub.f32 %v266_v63, %v522_v46  ;;  %vm227_vm1 = vcmp.gt.f32.partialorder %v219_v9, %v223_v51  ;;  %v231_v10 = vsub.f32 %v219_v9, %v223_v51 }
  0x47   :  { %v281_v59 = vsel %vm273_vm11, %v277_v30, %v265_v29  ;;  %v92_v13 = vsel %vm84_vm14, %v88_v15, %v76_v55  ;;  %v112_v3 = vmul.f32 0.03125, %v534_v56  ;;  %v271_v23 = vmul.f32 3.0517578e-05, %v485_v48 }
  0x48   :  { %vm289_vm15 = vcmp.gt.f32.partialorder %v281_v59, %v478_v42  ;;  %v293_v62 = vsub.f32 %v281_v59, %v478_v42  ;;  %v282_v60 = vsel %vm274_vm0, %v278_v41, %v266_v63  ;;  %v235_v42 = vsel %vm227_vm1, %v231_v10, %v219_v9 }
  0x49   :  { %vm290_vm3 = vcmp.gt.f32.partialorder %v282_v60, %v528_v54  ;;  %v294_v46 = vsub.f32 %v282_v60, %v528_v54  ;;  %vm243_vm4 = vcmp.gt.f32.partialorder %v235_v42, %v239_v53  ;;  %v247_v20 = vsub.f32 %v235_v42, %v239_v53 }
  0x4a   :  { %v297_v45 = vsel %vm289_vm15, %v293_v62, %v281_v59  ;;  %vm100_vm5 = vcmp.gt.f32.partialorder %v92_v13, %v96_v61  ;;  %v104_v0 = vsub.f32 %v92_v13, %v96_v61  ;;  %vm306_vm7 = vcmp.lt.f32.partialorder %v337_v4, 0.0 }
  0x4b   :  { %v301_v14 = vsub.f32 %v427_v6, %v297_v45  ;;  %v298_v22 = vsel %vm290_vm3, %v294_v46, %v282_v60  ;;  %v251_v32 = vsel %vm243_vm4, %v247_v20, %v235_v42  ;;  %v287_v54 = vmul.f32 1.5258789e-05, %v485_v48 }
  0x4c   :  { %v302_v24 = vsub.f32 %v431_v7, %v298_v22  ;;  %vm259_vm6 = vcmp.gt.f32.partialorder %v251_v32, %v255_v16  ;;  %v263_v17 = vsub.f32 %v251_v32, %v255_v16  ;;  %v108_v25 = vsel %vm100_vm5, %v104_v0, %v92_v13 }
  0x4d   :  { %v309_v21 = vsub.f32 0.0, %v301_v14  ;;  %v128_v28 = vmul.f32 0.015625, %v534_v56  ;;  %vm116_vm8 = vcmp.gt.f32.partialorder %v108_v25, %v112_v3  ;;  %v120_v26 = vsub.f32 %v108_v25, %v112_v3 }
  0x4e   :  { %v310_v34 = vsub.f32 0.0, %v302_v24  ;;  %v267_v35 = vsel %vm259_vm6, %v263_v17, %v251_v32  ;;  %v144_v7 = vmul.f32 0.0078125, %v534_v56  ;;  %v160_v43 = vmul.f32 0.00390625, %v534_v56 }
  0x4f   :  { %v313_v6 = vsel %vm579_vm2, %v309_v21, %v301_v14  ;;  %vm275_vm9 = vcmp.gt.f32.partialorder %v267_v35, %v271_v23  ;;  %v279_v36 = vsub.f32 %v267_v35, %v271_v23  ;;  %v124_v39 = vsel %vm116_vm8, %v120_v26, %v108_v25 }
  0x50   :  { %317 = vst [vmem:[#allocation5] sm:$0xff] %v313_v6  ;;  %v314_v38 = vsel %vm306_vm7, %v310_v34, %v302_v24  ;;  %vm132_vm10 = vcmp.gt.f32.partialorder %v124_v39, %v128_v28  ;;  %v136_v1 = vsub.f32 %v124_v39, %v128_v28  ;;  %vm307_vm13 = vcmp.lt.f32.partialorder %v338_v5, 0.0 }
  0x51   :  { %318 = vst [vmem:[#allocation5 + $0x8] sm:$0xff] %v314_v38  ;;  %v283_v19 = vsel %vm275_vm9, %v279_v36, %v267_v35  ;;  %v176_v50 = vmul.f32 0.001953125, %v534_v56  ;;  %v192_v53 = vmul.f32 0.0009765625, %v534_v56  ;;  %v208_v57 = vmul.f32 0.00048828125, %v534_v56 }
  0x52   :  { %vm291_vm11 = vcmp.gt.f32.partialorder %v283_v19, %v287_v54  ;;  %v295_v4 = vsub.f32 %v283_v19, %v287_v54  ;;  %v140_v48 = vsel %vm132_vm10, %v136_v1, %v124_v39  ;;  %v224_v5 = vmul.f32 0.00024414063, %v534_v56 }
  0x53   :  { %vm148_vm12 = vcmp.gt.f32.partialorder %v140_v48, %v144_v7  ;;  %v152_v47 = vsub.f32 %v140_v48, %v144_v7  ;;  %v240_v33 = vmul.f32 0.00012207031, %v534_v56  ;;  %v256_v61 = vmul.f32 6.1035156e-05, %v534_v56 }
  0x54   :  { %v299_v44 = vsel %vm291_vm11, %v295_v4, %v283_v19  ;;  %v272_v9 = vmul.f32 3.0517578e-05, %v534_v56  ;;  %v288_v45 = vmul.f32 1.5258789e-05, %v534_v56  ;;  %vm308_vm7 = vcmp.lt.f32.partialorder %v339_v12, 0.0 }
  0x55   :  { %v303_v49 = vsub.f32 %v440_v11, %v299_v44  ;;  %v156_v27 = vsel %vm148_vm12, %v152_v47, %v140_v48 }
  0x56   :  { %vm164_vm14 = vcmp.gt.f32.partialorder %v156_v27, %v160_v43  ;;  %v168_v52 = vsub.f32 %v156_v27, %v160_v43 }
  0x57   :  { %v311_v37 = vsub.f32 0.0, %v303_v49 }
  0x58   :  { %v172_v51 = vsel %vm164_vm14, %v168_v52, %v156_v27 }
  0x59   :  { %v315_v29 = vsel %vm307_vm13, %v311_v37, %v303_v49  ;;  %vm180_vm15 = vcmp.gt.f32.partialorder %v172_v51, %v176_v50  ;;  %v184_v55 = vsub.f32 %v172_v51, %v176_v50 }
  0x5a   :  { %319 = vst [vmem:[#allocation5 + $0x10] sm:$0xff] %v315_v29 }
  0x5b   :  { %v188_v30 = vsel %vm180_vm15, %v184_v55, %v172_v51 }
  0x5c   :  { %vm196_vm0 = vcmp.gt.f32.partialorder %v188_v30, %v192_v53  ;;  %v200_v11 = vsub.f32 %v188_v30, %v192_v53 }
  0x5e   :  { %v204_v2 = vsel %vm196_vm0, %v200_v11, %v188_v30 }
  0x5f   :  { %vm212_vm1 = vcmp.gt.f32.partialorder %v204_v2, %v208_v57  ;;  %v216_v40 = vsub.f32 %v204_v2, %v208_v57 }
  0x61   :  { %v220_v58 = vsel %vm212_vm1, %v216_v40, %v204_v2 }
  0x62   :  { %vm228_vm2 = vcmp.gt.f32.partialorder %v220_v58, %v224_v5  ;;  %v232_v59 = vsub.f32 %v220_v58, %v224_v5 }
  0x64   :  { %v236_v15 = vsel %vm228_vm2, %v232_v59, %v220_v58 }
  0x65   :  { %vm244_vm3 = vcmp.gt.f32.partialorder %v236_v15, %v240_v33  ;;  %v248_v62 = vsub.f32 %v236_v15, %v240_v33 }
  0x67   :  { %v252_v63 = vsel %vm244_vm3, %v248_v62, %v236_v15 }
  0x68   :  { %vm260_vm4 = vcmp.gt.f32.partialorder %v252_v63, %v256_v61  ;;  %v264_v41 = vsub.f32 %v252_v63, %v256_v61 }
  0x6a   :  { %v268_v10 = vsel %vm260_vm4, %v264_v41, %v252_v63 }
  0x6b   :  { %vm276_vm5 = vcmp.gt.f32.partialorder %v268_v10, %v272_v9  ;;  %v280_v31 = vsub.f32 %v268_v10, %v272_v9 }
  0x6d   :  { %v284_v13 = vsel %vm276_vm5, %v280_v31, %v268_v10 }
  0x6e   :  { %vm292_vm6 = vcmp.gt.f32.partialorder %v284_v13, %v288_v45  ;;  %v296_v14 = vsub.f32 %v284_v13, %v288_v45 }
  0x70   :  { %v300_v60 = vsel %vm292_vm6, %v296_v14, %v284_v13 }
  0x71   :  { %v304_v42 = vsub.f32 %v451_v18, %v300_v60 }
  0x73   :  { %v312_v16 = vsub.f32 0.0, %v304_v42 }
  0x75   :  { %v316_v46 = vsel %vm308_vm7, %v312_v16, %v304_v42 }
  0x76   :  { %320 = vst [vmem:[#allocation5 + $0x18] sm:$0xff] %v316_v46 }
  0x77   :  { %376 = shalt.err (!%p373_p12)
}
  0x78   :  { %s377_s22 = scalar_lea.hbm %s625_s1, 512 }
  0x79   :  { %p378_p13 = scmp.ne.s32.totalorder %s625_s1, %s377_s22  ;;  %p381_p0 = scmp.lt.u32.totalorder %s377_s22, %s625_s1 }
  0x7b   :  { %p383_p1 = pnand %p381_p0, %p378_p13 }
  0x7d   :  { %386 = shalt.err (!%p383_p1)
}
  0x7e   :  { %330 = dma.vmem_to_hbm [thread:$0]  %s328_s18, 512, %s625_s1, [#allocation4]  }
  0x7f   :  { %389 = dma.done.wait [#allocation4], 512  }
  0x80   :  { %390 = vsyncadd [#allocation4], 4294966784 }
  0x81   :  { %334 = vsyncpa [#allocation3], 1 }
  0x82   :  { %335 = vsyncpa [#allocation4], 1 }

</bundles_post_ra>
